<compile_context>
chip_gen: v7x
topology: tpu7x:2x2x1
jax: 0.10.0
libtpu: 0.0.40
codegen_flags: <defaults>
</compile_context>

<pallas_src>
import jax
import jax.numpy as jnp
from jax.experimental import pallas as pl
from jax.experimental.pallas import tpu as pltpu

LANE = 128        # lane width (last-dim quantum)
TB_MAX = 65536    # max batch-lane tile: ~1.8 MiB streamed/step, ~3.6 MiB VMEM dbl-buffered


def _round_up(n, m):
    return ((n + m - 1) // m) * m


def linear_kernel(xt_ref, wt_ref, b_ref, o_ref):
    """One lane tile of y^T = W @ x^T + b.

    xt_ref: (K, TB)  batch-on-lanes input tile (streamed).
    wt_ref: (N, K)   weight (transposed), VMEM-resident.
    b_ref : (N, 1)   bias, VMEM-resident.
    o_ref : (N, TB)  lane-dense output tile (unmasked full-lane stores).
    """
    x = xt_ref[...]                       # (K, TB)
    wt = wt_ref[...]                      # (N, K)
    acc = b_ref[...]                      # (N, 1) -> broadcasts over lanes
    # K = 4: statically unrolled VPU broadcast-FMAs; no MXU, no K/N padding.
    for k in range(x.shape[0]):
        acc = acc + wt[:, k:k + 1] * x[k:k + 1, :]
    o_ref[...] = acc.astype(o_ref.dtype)


@jax.jit
def linear_pallas(x, w, b):
    """y = x @ w + b  (nn.Linear(4, 3) forward).  x: (B, K), w: (K, N), b: (N,)."""
    B, K = x.shape
    Kw, N = w.shape
    assert K == Kw, (K, Kw)

    # Batch on the lane axis; only the batch axis is padded (to a multiple of
    # the lane tile).  K / N stay unpadded: their block dims equal the full
    # array dims, which satisfies the (8,128) constraint.
    B_lane = _round_up(B, LANE)
    TB = min(TB_MAX, B_lane)
    if B_lane >= 2 * LANE:
        # Keep >= 2 grid steps once the batch allows it, so the "parallel"
        # axis can split across v7x's two TensorCores (harmless on v5e/v6e).
        TB = min(TB, _round_up((B_lane + 1) // 2, LANE))
    B_pad = _round_up(B, TB)

    x_t = jnp.pad(x.T, ((0, 0), (0, B_pad - B)))   # (K, B_pad), batch on lanes
    w_t = w.T                                      # (N, K), tiny, VMEM-resident
    b_c = b.reshape(N, 1)                          # (N, 1), VMEM-resident

    # True (unpadded) cost so XLA schedules neighbouring ops sensibly.
    cost = pl.CostEstimate(
        flops=2 * B * K * N + B * N,
        transcendentals=0,
        bytes_accessed=4 * (B * K + B * N + K * N + N),
    )

    out_t = pl.pallas_call(
        linear_kernel,
        out_shape=jax.ShapeDtypeStruct((N, B_pad), x.dtype),
        grid_spec=pltpu.PrefetchScalarGridSpec(
            num_scalar_prefetch=0,
            grid=(B_pad // TB,),
            in_specs=[
                pl.BlockSpec((K, TB), lambda i: (0, i)),   # x^T tile, streamed on lanes
                pl.BlockSpec((N, K), lambda i: (0, 0)),    # W^T, resident (DMA'd once)
                pl.BlockSpec((N, 1), lambda i: (0, 0)),    # b,   resident
            ],
            out_specs=pl.BlockSpec((N, TB), lambda i: (0, i)),
        ),
        compiler_params=pltpu.CompilerParams(
            dimension_semantics=("parallel",),
        ),
        cost_estimate=cost,
    )(x_t, w_t, b_c)

    # Strip batch padding and return to the natural (B, N) layout.
    return out_t[:, :B].T


def init_params(key):
    # Mimic nn.Linear(4, 3) default init: U(-1/sqrt(in), 1/sqrt(in)) for W and b.
    k_w, k_b = jax.random.split(key)
    in_features, out_features = 4, 3
    bound = 1.0 / jnp.sqrt(float(in_features))
    # PyTorch weight is (out, in); store transposed (in, out) so y = x @ w + b.
    w_pt = jax.random.uniform(k_w, (out_features, in_features), jnp.float32, -bound, bound)
    b = jax.random.uniform(k_b, (out_features,), jnp.float32, -bound, bound)
    return w_pt.T, b


if __name__ == "__main__":
    key = jax.random.PRNGKey(0)
    k_x, k_p = jax.random.split(key)

    batch, in_features = 2, 4
    x = jax.random.normal(k_x, (batch, in_features), jnp.float32)
    w, b = init_params(k_p)

    y = linear_pallas(x, w, b)
    jax.block_until_ready(y)

    # Reference: plain JAX, same semantics as nn.Linear(4, 3).forward.
    y_ref = x @ w + b.reshape(1, -1)
    assert y.shape == (batch, 3), y.shape
    assert jnp.allclose(y, y_ref, atol=1e-5, rtol=1e-5)

    print("KERNEL_OK")
</pallas_src>

<mosaic_0001>
module attributes {stable_mosaic.version = 11 : i64} {
  func.func @linear_kernel(%arg0: i32, %arg1: memref<4x128xf32, #tpu.memory_space<vmem>>, %arg2: memref<3x4xf32, #tpu.memory_space<vmem>>, %arg3: memref<3x1xf32, #tpu.memory_space<vmem>>, %arg4: memref<3x128xf32, #tpu.memory_space<vmem>>) attributes {dimension_semantics = [#tpu.dimension_semantics<parallel>], iteration_bounds = array<i64: 1>, scalar_prefetch = 0 : i64, scratch_operands = 0 : i64, tpu.core_type = #tpu.core_type<tc>, window_params = [{transform_indices = @transform_0, window_bounds = array<i64: 4, 128>}, {pipeline_mode = #tpu.pipeline_mode<synchronous>, transform_indices = @transform_1, window_bounds = array<i64: 3, 4>}, {pipeline_mode = #tpu.pipeline_mode<synchronous>, transform_indices = @transform_2, window_bounds = array<i64: 3, 1>}, {transform_indices = @transform_3, window_bounds = array<i64: 3, 128>}]} {
    %c0 = arith.constant 0 : index
    %c0_0 = arith.constant 0 : index
    %0 = vector.load %arg1[%c0, %c0_0] : memref<4x128xf32, #tpu.memory_space<vmem>>, vector<4x128xf32>
    %c0_1 = arith.constant 0 : index
    %c0_2 = arith.constant 0 : index
    %1 = vector.load %arg2[%c0_1, %c0_2] : memref<3x4xf32, #tpu.memory_space<vmem>>, vector<3x4xf32>
    %c0_3 = arith.constant 0 : index
    %c0_4 = arith.constant 0 : index
    %2 = vector.load %arg3[%c0_3, %c0_4] : memref<3x1xf32, #tpu.memory_space<vmem>>, vector<3x1xf32>
    %3 = vector.extract_strided_slice %1 {offsets = [0, 0], sizes = [3, 1], strides = [1, 1]} : vector<3x4xf32> to vector<3x1xf32>
    %4 = vector.extract_strided_slice %0 {offsets = [0, 0], sizes = [1, 128], strides = [1, 1]} : vector<4x128xf32> to vector<1x128xf32>
    %5 = vector.broadcast %3 : vector<3x1xf32> to vector<3x128xf32>
    %6 = vector.broadcast %4 : vector<1x128xf32> to vector<3x128xf32>
    %7 = arith.mulf %5, %6 : vector<3x128xf32>
    %8 = vector.broadcast %2 : vector<3x1xf32> to vector<3x128xf32>
    %9 = arith.addf %8, %7 : vector<3x128xf32>
    %10 = vector.extract_strided_slice %1 {offsets = [0, 1], sizes = [3, 1], strides = [1, 1]} : vector<3x4xf32> to vector<3x1xf32>
    %11 = vector.extract_strided_slice %0 {offsets = [1, 0], sizes = [1, 128], strides = [1, 1]} : vector<4x128xf32> to vector<1x128xf32>
    %12 = vector.broadcast %10 : vector<3x1xf32> to vector<3x128xf32>
    %13 = vector.broadcast %11 : vector<1x128xf32> to vector<3x128xf32>
    %14 = arith.mulf %12, %13 : vector<3x128xf32>
    %15 = arith.addf %9, %14 : vector<3x128xf32>
    %16 = vector.extract_strided_slice %1 {offsets = [0, 2], sizes = [3, 1], strides = [1, 1]} : vector<3x4xf32> to vector<3x1xf32>
    %17 = vector.extract_strided_slice %0 {offsets = [2, 0], sizes = [1, 128], strides = [1, 1]} : vector<4x128xf32> to vector<1x128xf32>
    %18 = vector.broadcast %16 : vector<3x1xf32> to vector<3x128xf32>
    %19 = vector.broadcast %17 : vector<1x128xf32> to vector<3x128xf32>
    %20 = arith.mulf %18, %19 : vector<3x128xf32>
    %21 = arith.addf %15, %20 : vector<3x128xf32>
    %22 = vector.extract_strided_slice %1 {offsets = [0, 3], sizes = [3, 1], strides = [1, 1]} : vector<3x4xf32> to vector<3x1xf32>
    %23 = vector.extract_strided_slice %0 {offsets = [3, 0], sizes = [1, 128], strides = [1, 1]} : vector<4x128xf32> to vector<1x128xf32>
    %24 = vector.broadcast %22 : vector<3x1xf32> to vector<3x128xf32>
    %25 = vector.broadcast %23 : vector<1x128xf32> to vector<3x128xf32>
    %26 = arith.mulf %24, %25 : vector<3x128xf32>
    %27 = arith.addf %21, %26 : vector<3x128xf32>
    %c0_5 = arith.constant 0 : index
    %c0_6 = arith.constant 0 : index
    %28 = vector.load %arg4[%c0_5, %c0_6] : memref<3x128xf32, #tpu.memory_space<vmem>>, vector<3x128xf32>
    tpu.vector_store %arg4[%c0_5, %c0_6], %27 {strides = array<i32>} : memref<3x128xf32, #tpu.memory_space<vmem>>, vector<3x128xf32>,
    return
  }
  func.func @transform_0(%arg0: i32) -> (i32, i32) {
    %c0_i32 = arith.constant 0 : i32
    %c0_i32_0 = arith.constant 0 : i32
    return %c0_i32, %arg0 : i32, i32
  }
  func.func @transform_1(%arg0: i32) -> (i32, i32) {
    %c0_i32 = arith.constant 0 : i32
    %c0_i32_0 = arith.constant 0 : i32
    %c0_i32_1 = arith.constant 0 : i32
    return %c0_i32, %c0_i32_0 : i32, i32
  }
  func.func @transform_2(%arg0: i32) -> (i32, i32) {
    %c0_i32 = arith.constant 0 : i32
    %c0_i32_0 = arith.constant 0 : i32
    %c0_i32_1 = arith.constant 0 : i32
    return %c0_i32, %c0_i32_0 : i32, i32
  }
  func.func @transform_3(%arg0: i32) -> (i32, i32) {
    %c0_i32 = arith.constant 0 : i32
    %c0_i32_0 = arith.constant 0 : i32
    return %c0_i32, %arg0 : i32, i32
  }
}

</mosaic_0001>

<bundles_post_ra>
// kernel: linear_pallas.1
= control target key start
LH: loop header
LB: loop body
LE: loop exit
PB: predicated region body
PF: predicated region fallthrough
CT: control target
= control target key end

     0   :  { %v76_v0 = vmov 0   ;;  %v77_v1 = vmov 1   ;;  %v78_v4 = vmov 2   ;;  %v79_v5 = vmov 3   ;;  %s112_s1 = inlined_call_operand.vmem [shape: f32[3,4], index: 1, kind: input, shape index: {}]   ;;  %s113_s2 = inlined_call_operand.vmem [shape: f32[3,1], index: 2, kind: input, shape index: {}]   ;;  %s114_s0 = inlined_call_operand.vmem [shape: f32[4,128], index: 0, kind: input, shape index: {}]   ;;  %s115_s3 = inlined_call_operand.vmem [shape: f32[3,128], index: 3, kind: output, shape index: {}]  }
   0x1   :  { %72 = vset.pattern.permute.xlu0 %v76_v0  ;;  %73 = vset.pattern.permute.xlu1 %v77_v1  ;;  %v15_v2 = vld [vmem:[%s112_s1] sm:$0x7]  ;;  %v22_v6 = vlaneseq }
   0x2   :  { %19 = vperm.xlu0 %72, %v15_v2   ;;  %34 = vperm.xlu1 %73, %v15_v2   ;;  %v16_v3 = vld [vmem:[%s113_s2] sm:$0x7] }
   0x3   :  { %v23_v7 = vshrl.u32 %v22_v6, 7  ;;  %v14_v9 = vld [vmem:[%s114_s0] sm:$0xf] }
   0x5   :  { %v24_v8 = vsub.s32 0, %v23_v7  ;;  %v39_v10 = vsub.s32 1, %v23_v7  ;;  %v49_v11 = vsub.s32 2, %v23_v7  ;;  %v59_v17 = vsub.s32 3, %v23_v7 }
   0x6   :  { %29 = vperm.xlu0 %72, %v16_v3   ;;  %74 = vset.pattern.permute.xlu1 %v78_v4 }
   0x7   :  { %44 = vperm.xlu1 %74, %v15_v2   ;;  %v25_v12 = vrot.slane %v14_v9, %v24_v8  ;;  %v40_v15 = vrot.slane %v14_v9, %v39_v10  ;;  %v50_v16 = vrot.slane %v14_v9, %v49_v11  ;;  %v60_v24 = vrot.slane %v14_v9, %v59_v17 }
   0xa   :  { %75 = vset.pattern.permute.xlu0 %v79_v5 }
   0xb   :  { %54 = vperm.xlu0 %75, %v15_v2  }
  0x81   :  { %v20_v13 = vpop.permute.xlu0 %19  ;;  %v35_v14 = vpop.permute.xlu1 %34 }
  0x82   :  { %v26_v18 = vmul.f32 %v25_v12, %v20_v13  ;;  %v41_v20 = vmul.f32 %v40_v15, %v35_v14 }
  0x85   :  { %v30_v19 = vpop.permute.xlu0 %29 }
  0x86   :  { %v32_v21 = vadd.f32 %v30_v19, %v26_v18  ;;  %v45_v22 = vpop.permute.xlu1 %44 }
  0x87   :  { %v51_v23 = vmul.f32 %v50_v16, %v45_v22 }
  0x88   :  { %v42_v25 = vadd.f32 %v41_v20, %v32_v21 }
  0x8a   :  { %v52_v26 = vadd.f32 %v51_v23, %v42_v25  ;;  %v55_v27 = vpop.permute.xlu0 %54 }
  0x8b   :  { %v61_v28 = vmul.f32 %v60_v24, %v55_v27 }
  0x8d   :  { %v62_v29 = vadd.f32 %v61_v28, %v52_v26 }
  0x8f   :  { %63 = vst [vmem:[%s115_s3] sm:$0x7] %v62_v29 }

</bundles_post_ra>
